<compile_context>
chip_gen: v7x
topology: tpu7x:2x2x1
jax: 0.10.0
libtpu: 0.0.40
codegen_flags: <defaults>
</compile_context>

<pallas_src>
import jax
import jax.numpy as jnp
from jax.experimental import pallas as pl
from jax.experimental.pallas import tpu as pltpu


def mlp_kernel(x_ref, w1_ref, b1_ref, w2_ref, b2_ref, w3_ref, b3_ref, o_ref):
    # Cast streamed f32 rows to bf16 right before the MXU (avoids a separate
    # wrapper-side convert pass over HBM).
    x = x_ref[...].astype(jnp.bfloat16)

    # Layer 1: (TB, K) @ (K, H1) + (1, H1) -> ReLU   (bf16 operands, f32 acc)
    h1 = jnp.dot(x, w1_ref[...], preferred_element_type=jnp.float32)
    h1 = jnp.maximum(h1 + b1_ref[...], 0.0).astype(jnp.bfloat16)

    # Layer 2: (TB, H1) @ (H1, H2) + (1, H2) -> ReLU
    h2 = jnp.dot(h1, w2_ref[...], preferred_element_type=jnp.float32)
    h2 = jnp.maximum(h2 + b2_ref[...], 0.0).astype(jnp.bfloat16)

    # Layer 3: (TB, H2) @ (H2, N) + (1, N) -> lane-dense f32 store
    out = jnp.dot(h2, w3_ref[...], preferred_element_type=jnp.float32)
    o_ref[...] = (out + b3_ref[...]).astype(o_ref.dtype)


def _round_up(n, m):
    return ((n + m - 1) // m) * m


def _pad2(a, rows, cols):
    r, c = a.shape
    return jnp.pad(a, ((0, rows - r), (0, cols - c)))


def _vmem_capacity_bytes():
    """Physical per-TensorCore VMEM; conservative v7x fallback if unavailable."""
    try:
        info = pltpu.get_tpu_info()
        cap = getattr(info, "vmem_capacity_bytes", None)
        if cap:
            return int(cap)
    except Exception:
        pass
    return 64 << 20  # v7x per-TC VMEM (smallest current generation)


def prepare_params(w1, b1, w2, b2, w3, b3):
    """Pad to lane/MXU-friendly shapes and cast ONCE, outside the per-call path.

    Zero padding is exact for this matmul+bias+ReLU chain.
    """
    size_in = w1.shape[0]
    size_out = w3.shape[1]
    K = _round_up(size_in, 128)   # input features
    H1 = _round_up(64, 128)       # hidden 1: 64 -> 128
    H2 = 256                      # hidden 2 already aligned
    N = _round_up(size_out, 128)  # output features (lane-dense store)
    return (
        _pad2(w1, K, H1).astype(jnp.bfloat16),
        _pad2(b1, 1, H1).astype(jnp.float32),
        _pad2(w2, H1, H2).astype(jnp.bfloat16),
        _pad2(b2, 1, H2).astype(jnp.float32),
        _pad2(w3, H2, N).astype(jnp.bfloat16),
        _pad2(b3, 1, N).astype(jnp.float32),
    )


def dummy_nn_sort2(x, prepared_params, *, block_b=512):
    """Fused 3-layer MLP forward pass.

    x: (B, size) f32; prepared_params from prepare_params().
    Returns: (B, size) f32.
    """
    w1p, b1p, w2p, b2p, w3p, b3p = prepared_params
    B, size = x.shape
    K, H1 = w1p.shape
    H2, N = w3p.shape
    assert w2p.shape == (H1, H2) and K >= size and N >= size

    # --- VMEM-budget-derived batch tile -------------------------------------
    physical_vmem = _vmem_capacity_bytes()
    budget = physical_vmem // 2  # stay well inside scoped VMEM on every gen

    # Resident weights/biases (single-buffered via pl.Buffered(1)).
    weight_bytes = (w1p.size + w2p.size + w3p.size) * 2 \
        + (b1p.size + b2p.size + b3p.size) * 4
    # Per-row cost: double-buffered f32 x/out tiles + h1/h2 (f32 acc + bf16 copy)
    # + the f32 layer-3 accumulator.
    per_row = 2 * (K * 4 + N * 4) + (H1 + H2) * (4 + 2) + N * 4
    headroom = 4 << 20
    avail = budget - weight_bytes - headroom
    if avail >= per_row * 8:
        tb_vmem = (avail // per_row) // 8 * 8
    else:
        tb_vmem = 8

    TB = max(8, min(block_b, tb_vmem, _round_up(B, 8)))
    Bp = _round_up(B, TB)
    # Guarantee >= 2 grid steps when the batch allows it, so the "parallel"
    # batch axis can feed both v7x TensorCores (free on v5e/v6e).
    if Bp // TB == 1 and B > 8:
        TB = _round_up(pl.cdiv(B, 2), 8)
        Bp = _round_up(B, TB)
    grid = (Bp // TB,)

    # --- pad x only when necessary; keep it f32 (cast happens in-kernel) ----
    if (Bp, K) != (B, size):
        xp = jnp.pad(x, ((0, Bp - B), (0, K - size)))
    else:
        xp = x

    cost = pl.CostEstimate(
        flops=2 * Bp * (K * H1 + H1 * H2 + H2 * N),
        transcendentals=0,
        bytes_accessed=xp.size * 4 + weight_bytes + Bp * N * 4,
    )

    # VMEM limit: double-buffered streamed tiles + weights (counted twice as
    # headroom in case default double-buffering is kept) + activation scratch.
    vmem_bytes = (
        2 * TB * (K * 4 + N * 4)
        + 2 * weight_bytes
        + TB * ((H1 + H2) * (4 + 2) + N * 4)
        + headroom
    )
    vmem_limit = int(min(max(vmem_bytes, 8 << 20), physical_vmem))

    resident = dict(pipeline_mode=pl.Buffered(1))  # grid-invariant operands
    out_padded = pl.pallas_call(
        mlp_kernel,
        out_shape=jax.ShapeDtypeStruct((Bp, N), jnp.float32),
        grid=grid,
        in_specs=[
            pl.BlockSpec((TB, K), lambda i: (i, 0)),              # x: streams over batch
            pl.BlockSpec((K, H1), lambda i: (0, 0), **resident),  # weights/biases: resident
            pl.BlockSpec((1, H1), lambda i: (0, 0), **resident),
            pl.BlockSpec((H1, H2), lambda i: (0, 0), **resident),
            pl.BlockSpec((1, H2), lambda i: (0, 0), **resident),
            pl.BlockSpec((H2, N), lambda i: (0, 0), **resident),
            pl.BlockSpec((1, N), lambda i: (0, 0), **resident),
        ],
        out_specs=pl.BlockSpec((TB, N), lambda i: (i, 0)),
        compiler_params=pltpu.CompilerParams(
            dimension_semantics=("parallel",),
            vmem_limit_bytes=vmem_limit,
        ),
        cost_estimate=cost,
    )(xp, w1p, b1p, w2p, b2p, w3p, b3p)

    if (Bp, N) == (B, size):
        return out_padded
    return out_padded[:B, :size]


def init_params(key, size):
    """Deterministic parameter init; Linear weights stored as (in, out)."""
    k1, k2, k3, k4, k5, k6 = jax.random.split(key, 6)
    w1 = jax.random.normal(k1, (size, 64), jnp.float32) * 0.1
    b1 = jax.random.normal(k2, (1, 64), jnp.float32) * 0.1
    w2 = jax.random.normal(k3, (64, 256), jnp.float32) * 0.1
    b2 = jax.random.normal(k4, (1, 256), jnp.float32) * 0.1
    w3 = jax.random.normal(k5, (256, size), jnp.float32) * 0.1
    b3 = jax.random.normal(k6, (1, size), jnp.float32) * 0.1
    return w1, b1, w2, b2, w3, b3


def reference_forward_f32(x, w1, b1, w2, b2, w3, b3):
    h1 = jnp.maximum(x @ w1 + b1, 0.0)
    h2 = jnp.maximum(h1 @ w2 + b2, 0.0)
    return h2 @ w3 + b3


def reference_forward_bf16(x, w1, b1, w2, b2, w3, b3):
    """Reference with the same bf16 operand / f32 accumulate numerics."""
    bf = jnp.bfloat16
    h1 = jnp.dot(x.astype(bf), w1.astype(bf), preferred_element_type=jnp.float32) + b1
    h1 = jnp.maximum(h1, 0.0).astype(bf)
    h2 = jnp.dot(h1, w2.astype(bf), preferred_element_type=jnp.float32) + b2
    h2 = jnp.maximum(h2, 0.0).astype(bf)
    return jnp.dot(h2, w3.astype(bf), preferred_element_type=jnp.float32) + b3


if __name__ == "__main__":
    size = 16   # feature dimension of the "list of integers"
    batch = 8

    key = jax.random.PRNGKey(0)
    kx, kp = jax.random.split(key)
    x = jax.random.normal(kx, (batch, size), jnp.float32)
    raw_params = init_params(kp, size)
    prepared = prepare_params(*raw_params)   # pad + cast once, outside per-call path

    out = jax.block_until_ready(dummy_nn_sort2(x, prepared))
    assert out.shape == (batch, size)

    # Tight check against a numerics-matched (bf16 operand) reference.
    ref_bf16 = reference_forward_bf16(x, *raw_params)
    assert jnp.allclose(out, ref_bf16, atol=2e-3, rtol=2e-3), "mismatch vs bf16 reference"

    # Loose check against the pure-f32 PyTorch-equivalent forward.
    ref_f32 = reference_forward_f32(x, *raw_params)
    assert jnp.allclose(out, ref_f32, atol=5e-2, rtol=5e-2), "mismatch vs f32 reference"

    print("KERNEL_OK")
</pallas_src>

<mosaic_0001>
module attributes {stable_mosaic.version = 11 : i64} {
  func.func @mlp_kernel(%arg0: i32, %arg1: memref<8x128xf32, #tpu.memory_space<vmem>>, %arg2: memref<128x128xbf16, #tpu.memory_space<vmem>>, %arg3: memref<1x128xf32, #tpu.memory_space<vmem>>, %arg4: memref<128x256xbf16, #tpu.memory_space<vmem>>, %arg5: memref<1x256xf32, #tpu.memory_space<vmem>>, %arg6: memref<256x128xbf16, #tpu.memory_space<vmem>>, %arg7: memref<1x128xf32, #tpu.memory_space<vmem>>, %arg8: memref<8x128xf32, #tpu.memory_space<vmem>>) attributes {dimension_semantics = [#tpu.dimension_semantics<parallel>], iteration_bounds = array<i64: 1>, scalar_prefetch = 0 : i64, scratch_operands = 0 : i64, tpu.core_type = #tpu.core_type<tc>, window_params = [{transform_indices = @transform_0, window_bounds = array<i64: 8, 128>}, {pipeline_mode = #tpu.pipeline_mode<synchronous>, transform_indices = @transform_1, window_bounds = array<i64: 128, 128>}, {pipeline_mode = #tpu.pipeline_mode<synchronous>, transform_indices = @transform_2, window_bounds = array<i64: 1, 128>}, {pipeline_mode = #tpu.pipeline_mode<synchronous>, transform_indices = @transform_3, window_bounds = array<i64: 128, 256>}, {pipeline_mode = #tpu.pipeline_mode<synchronous>, transform_indices = @transform_4, window_bounds = array<i64: 1, 256>}, {pipeline_mode = #tpu.pipeline_mode<synchronous>, transform_indices = @transform_5, window_bounds = array<i64: 256, 128>}, {pipeline_mode = #tpu.pipeline_mode<synchronous>, transform_indices = @transform_6, window_bounds = array<i64: 1, 128>}, {transform_indices = @transform_7, window_bounds = array<i64: 8, 128>}]} {
    %c0 = arith.constant 0 : index
    %c0_0 = arith.constant 0 : index
    %0 = vector.load %arg1[%c0, %c0_0] : memref<8x128xf32, #tpu.memory_space<vmem>>, vector<8x128xf32>
    %1 = arith.truncf %0 : vector<8x128xf32> to vector<8x128xbf16>
    %c0_1 = arith.constant 0 : index
    %c0_2 = arith.constant 0 : index
    %2 = vector.load %arg2[%c0_1, %c0_2] : memref<128x128xbf16, #tpu.memory_space<vmem>>, vector<128x128xbf16>
    %cst = arith.constant dense<0.000000e+00> : vector<8x128xf32>
    %3 = tpu.matmul %1, %2, %cst {dimension_numbers = #tpu.dot_dimension_numbers<[1], [0], [0], [1], [0, 0, 1, 1], [], []>} : vector<8x128xbf16>, vector<128x128xbf16>, vector<8x128xf32> -> vector<8x128xf32>
    %c0_3 = arith.constant 0 : index
    %c0_4 = arith.constant 0 : index
    %4 = vector.load %arg3[%c0_3, %c0_4] : memref<1x128xf32, #tpu.memory_space<vmem>>, vector<1x128xf32>
    %5 = vector.broadcast %4 : vector<1x128xf32> to vector<8x128xf32>
    %6 = arith.addf %3, %5 : vector<8x128xf32>
    %cst_5 = arith.constant 0.000000e+00 : f32
    %7 = vector.broadcast %cst_5 : f32 to vector<8x128xf32>
    %8 = arith.maximumf %6, %7 : vector<8x128xf32>
    %9 = arith.truncf %8 : vector<8x128xf32> to vector<8x128xbf16>
    %c0_6 = arith.constant 0 : index
    %c0_7 = arith.constant 0 : index
    %10 = vector.load %arg4[%c0_6, %c0_7] : memref<128x256xbf16, #tpu.memory_space<vmem>>, vector<128x256xbf16>
    %cst_8 = arith.constant dense<0.000000e+00> : vector<8x256xf32>
    %11 = tpu.matmul %9, %10, %cst_8 {dimension_numbers = #tpu.dot_dimension_numbers<[1], [0], [0], [1], [0, 0, 1, 1], [], []>} : vector<8x128xbf16>, vector<128x256xbf16>, vector<8x256xf32> -> vector<8x256xf32>
    %c0_9 = arith.constant 0 : index
    %c0_10 = arith.constant 0 : index
    %12 = vector.load %arg5[%c0_9, %c0_10] : memref<1x256xf32, #tpu.memory_space<vmem>>, vector<1x256xf32>
    %13 = vector.broadcast %12 : vector<1x256xf32> to vector<8x256xf32>
    %14 = arith.addf %11, %13 : vector<8x256xf32>
    %cst_11 = arith.constant 0.000000e+00 : f32
    %15 = vector.broadcast %cst_11 : f32 to vector<8x256xf32>
    %16 = arith.maximumf %14, %15 : vector<8x256xf32>
    %17 = arith.truncf %16 : vector<8x256xf32> to vector<8x256xbf16>
    %c0_12 = arith.constant 0 : index
    %c0_13 = arith.constant 0 : index
    %18 = vector.load %arg6[%c0_12, %c0_13] : memref<256x128xbf16, #tpu.memory_space<vmem>>, vector<256x128xbf16>
    %cst_14 = arith.constant dense<0.000000e+00> : vector<8x128xf32>
    %19 = tpu.matmul %17, %18, %cst_14 {dimension_numbers = #tpu.dot_dimension_numbers<[1], [0], [0], [1], [0, 0, 1, 1], [], []>} : vector<8x256xbf16>, vector<256x128xbf16>, vector<8x128xf32> -> vector<8x128xf32>
    %c0_15 = arith.constant 0 : index
    %c0_16 = arith.constant 0 : index
    %20 = vector.load %arg7[%c0_15, %c0_16] : memref<1x128xf32, #tpu.memory_space<vmem>>, vector<1x128xf32>
    %21 = vector.broadcast %20 : vector<1x128xf32> to vector<8x128xf32>
    %22 = arith.addf %19, %21 : vector<8x128xf32>
    %c0_17 = arith.constant 0 : index
    %c0_18 = arith.constant 0 : index
    %23 = vector.load %arg8[%c0_17, %c0_18] : memref<8x128xf32, #tpu.memory_space<vmem>>, vector<8x128xf32>
    tpu.vector_store %arg8[%c0_17, %c0_18], %22 {strides = array<i32>} : memref<8x128xf32, #tpu.memory_space<vmem>>, vector<8x128xf32>,
    return
  }
  func.func @transform_0(%arg0: i32) -> (i32, i32) {
    %c0_i32 = arith.constant 0 : i32
    %c0_i32_0 = arith.constant 0 : i32
    return %arg0, %c0_i32 : i32, i32
  }
  func.func @transform_1(%arg0: i32) -> (i32, i32) {
    %c0_i32 = arith.constant 0 : i32
    %c0_i32_0 = arith.constant 0 : i32
    %c0_i32_1 = arith.constant 0 : i32
    return %c0_i32, %c0_i32_0 : i32, i32
  }
  func.func @transform_2(%arg0: i32) -> (i32, i32) {
    %c0_i32 = arith.constant 0 : i32
    %c0_i32_0 = arith.constant 0 : i32
    %c0_i32_1 = arith.constant 0 : i32
    return %c0_i32, %c0_i32_0 : i32, i32
  }
  func.func @transform_3(%arg0: i32) -> (i32, i32) {
    %c0_i32 = arith.constant 0 : i32
    %c0_i32_0 = arith.constant 0 : i32
    %c0_i32_1 = arith.constant 0 : i32
    return %c0_i32, %c0_i32_0 : i32, i32
  }
  func.func @transform_4(%arg0: i32) -> (i32, i32) {
    %c0_i32 = arith.constant 0 : i32
    %c0_i32_0 = arith.constant 0 : i32
    %c0_i32_1 = arith.constant 0 : i32
    return %c0_i32, %c0_i32_0 : i32, i32
  }
  func.func @transform_5(%arg0: i32) -> (i32, i32) {
    %c0_i32 = arith.constant 0 : i32
    %c0_i32_0 = arith.constant 0 : i32
    %c0_i32_1 = arith.constant 0 : i32
    return %c0_i32, %c0_i32_0 : i32, i32
  }
  func.func @transform_6(%arg0: i32) -> (i32, i32) {
    %c0_i32 = arith.constant 0 : i32
    %c0_i32_0 = arith.constant 0 : i32
    %c0_i32_1 = arith.constant 0 : i32
    return %c0_i32, %c0_i32_0 : i32, i32
  }
  func.func @transform_7(%arg0: i32) -> (i32, i32) {
    %c0_i32 = arith.constant 0 : i32
    %c0_i32_0 = arith.constant 0 : i32
    return %arg0, %c0_i32 : i32, i32
  }
}

</mosaic_0001>

<bundles_post_ra>
// kernel: tpu_custom_call.1
= control target key start
LH: loop header
LB: loop body
LE: loop exit
PB: predicated region body
PF: predicated region fallthrough
CT: control target
= control target key end

     0   :  { %12 = vsyncpa [#allocation3], 0  ;;  %s940_s0 = inlined_call_operand.hbm [shape: f32[8,128], index: 0, kind: input, shape index: {}]   ;;  %s941_s1 = inlined_call_operand.hbm [shape: bf16[128,128], index: 1, kind: input, shape index: {}]   ;;  %s942_s2 = inlined_call_operand.vmem [shape: f32[1,128], index: 2, kind: input, shape index: {}]   ;;  %s943_s3 = inlined_call_operand.hbm [shape: bf16[128,256], index: 3, kind: input, shape index: {}]   ;;  %s944_s4 = inlined_call_operand.vmem [shape: f32[1,256], index: 4, kind: input, shape index: {}]   ;;  %s945_s5 = inlined_call_operand.hbm [shape: bf16[256,128], index: 5, kind: input, shape index: {}]   ;;  %s946_s6 = inlined_call_operand.vmem [shape: f32[1,128], index: 6, kind: input, shape index: {}]   ;;  %s947_s7 = inlined_call_operand.hbm [shape: f32[8,128], index: 7, kind: output, shape index: {}]  }
   0x1   :  { %13 = vsyncpa [#allocation6], 0 }
   0x2   :  { %14 = vsyncpa [#allocation9], 0 }
   0x3   :  { %15 = vsyncpa [#allocation4], 0  ;;  %s813_s24 = smov [#allocation5]   ;;  %s695_s28 = scalar_lea.hbm %s941_s1, 1024 }
   0x4   :  { %s31_s25 = sshll.u32 %s813_s24, 4  ;;  %p696_p0 = scmp.ne.s32.totalorder %s941_s1, %s695_s28  ;;  %s32_s25 = int_to_ptr.vmem [resolvable:$true] %s31_s25 }
   0x5   :  { %p699_p1 = scmp.lt.u32.totalorder %s695_s28, %s941_s1 }
   0x7   :  { %p701_p2 = pnand %p699_p1, %p696_p0 }
   0x9   :  { %704 = shalt.err (!%p701_p2)
}
   0xa   :  { %s705_s10 = scalar_lea.vmem %s32_s25, 1024  ;;  %p710_p4 = scmp.lt.s32.totalorder %s32_s25, %s32_s25 }
   0xb   :  { %p706_p3 = scmp.ne.s32.totalorder %s32_s25, %s705_s10  ;;  %p711_p5 = scmp.lt.s32.totalorder %s705_s10, %s705_s10 }
   0xd   :  { %p712_p6 = por %p711_p5, %p710_p4 }
   0xf   :  { %p713_p7 = pnand %p712_p6, %p706_p3 }
  0x11   :  { %716 = shalt.err (!%p713_p7)
}
  0x12   :  { %s814_s11 = smov 64   ;;  %s815_s12 = smov 4  }
  0x13   :  { %37 = dma.hbm_to_vmem [thread:$0]  %s941_s1, 1024, %s32_s25, [#allocation6], %s814_s11, %s814_s11, %s815_s12  }
  0x14   :  { %s816_s15 = smov [#allocation2]   ;;  %s817_s17 = smov [#allocation7]  }
  0x15   :  { %s22_s16 = sshll.u32 %s816_s15, 4  ;;  %s45_s18 = sshll.u32 %s817_s17, 4  ;;  %s23_s16 = int_to_ptr.vmem [resolvable:$true] %s22_s16  ;;  %s46_s18 = int_to_ptr.vmem [resolvable:$true] %s45_s18 }
  0x16   :  { %s717_s21 = scalar_lea.hbm %s940_s0, 128 }
  0x17   :  { %p718_p8 = scmp.ne.s32.totalorder %s940_s0, %s717_s21  ;;  %p721_p9 = scmp.lt.u32.totalorder %s717_s21, %s940_s0 }
  0x19   :  { %p723_p10 = pnand %p721_p9, %p718_p8 }
  0x1b   :  { %726 = shalt.err (!%p723_p10)
}
  0x1c   :  { %s727_s1 = scalar_lea.vmem %s23_s16, 128  ;;  %p732_p12 = scmp.lt.s32.totalorder %s23_s16, %s23_s16 }
  0x1d   :  { %p728_p11 = scmp.ne.s32.totalorder %s23_s16, %s727_s1  ;;  %p733_p13 = scmp.lt.s32.totalorder %s727_s1, %s727_s1 }
  0x1f   :  { %p734_p0 = por %p733_p13, %p732_p12 }
  0x21   :  { %p735_p1 = pnand %p734_p0, %p728_p11 }
  0x23   :  { %738 = shalt.err (!%p735_p1)
}
  0x24   :  { %25 = dma.hbm_to_vmem [thread:$0]  %s940_s0, 128, %s23_s16, [#allocation3]  }
  0x25   :  { %s739_s30 = scalar_lea.hbm %s943_s3, 2048 }
  0x26   :  { %p740_p2 = scmp.ne.s32.totalorder %s943_s3, %s739_s30  ;;  %p743_p3 = scmp.lt.u32.totalorder %s739_s30, %s943_s3 }
  0x28   :  { %p745_p4 = pnand %p743_p3, %p740_p2 }
  0x2a   :  { %748 = shalt.err (!%p745_p4)
}
  0x2b   :  { %s749_s14 = scalar_lea.vmem %s46_s18, 2048  ;;  %p754_p6 = scmp.lt.s32.totalorder %s46_s18, %s46_s18 }
  0x2c   :  { %p750_p5 = scmp.ne.s32.totalorder %s46_s18, %s749_s14  ;;  %p755_p7 = scmp.lt.s32.totalorder %s749_s14, %s749_s14 }
  0x2e   :  { %p756_p8 = por %p755_p7, %p754_p6 }
  0x30   :  { %p757_p9 = pnand %p756_p8, %p750_p5 }
  0x32   :  { %760 = shalt.err (!%p757_p9)
}
  0x33   :  { %s818_s0 = smov 128   ;;  %s819_s15 = smov 8  }
  0x34   :  { %51 = dma.hbm_to_vmem [thread:$0]  %s943_s3, 2048, %s46_s18, [#allocation6], %s818_s0, %s818_s0, %s819_s15  }
  0x35   :  { %s820_s19 = smov [#allocation8]   ;;  %s761_s23 = scalar_lea.hbm %s945_s5, 2048 }
  0x36   :  { %s59_s20 = sshll.u32 %s820_s19, 4  ;;  %p762_p10 = scmp.ne.s32.totalorder %s945_s5, %s761_s23  ;;  %s60_s20 = int_to_ptr.vmem [resolvable:$true] %s59_s20 }
  0x37   :  { %p765_p11 = scmp.lt.u32.totalorder %s761_s23, %s945_s5 }
  0x39   :  { %p767_p12 = pnand %p765_p11, %p762_p10 }
  0x3b   :  { %770 = shalt.err (!%p767_p12)
}
  0x3c   :  { %s771_s27 = scalar_lea.vmem %s60_s20, 2048  ;;  %p776_p0 = scmp.lt.s32.totalorder %s60_s20, %s60_s20 }
  0x3d   :  { %p772_p13 = scmp.ne.s32.totalorder %s60_s20, %s771_s27  ;;  %p777_p1 = scmp.lt.s32.totalorder %s771_s27, %s771_s27 }
  0x3f   :  { %p778_p2 = por %p777_p1, %p776_p0 }
  0x41   :  { %p779_p3 = pnand %p778_p2, %p772_p13 }
  0x43   :  { %782 = shalt.err (!%p779_p3)
}
  0x44   :  { %65 = dma.hbm_to_vmem [thread:$0]  %s945_s5, 2048, %s60_s20, [#allocation9], %s814_s11, %s814_s11, %s815_s12  }
  0x45   :  { %805 = dma.done.wait [#allocation3], 128  }
  0x46   :  { %806 = vsyncadd [#allocation3], 4294967168 }
  0x47   :  { %807 = dma.done.wait [#allocation6], 3072  }
  0x48   :  { %808 = vsyncadd [#allocation6], 4294964224 }
  0x49   :  { %809 = dma.done.wait [#allocation9], 2048  }
  0x4a   :  { %810 = vsyncadd [#allocation9], 4294965248  ;;  %v821_v0 = vmov 0.0   ;;  %vm822_vm0 = vmmov 0   ;;  %v647_v1 = vld [vmem:[#allocation5] sm:$0xff]   ;;  %v648_v2 = vld [vmem:[#allocation5 + $0x8] sm:$0xff]   ;;  %v214_v52 = vlaneseq }
  0x4b   :  { %615 = vmatprep.subr.bf16.mxu0 %v821_v0  ;;  %631 = vmatprep.mubr.msk.bf16.mxu0 %vm822_vm0, %v821_v0  ;;  %v649_v3 = vld [vmem:[#allocation5 + $0x10] sm:$0xff]   ;;  %v655_v4 = vld [vmem:[#allocation7 + $0x4] ss:$8 sps:$4 sm:$0xff]   ;;  %v657_v5 = vld [vmem:[#allocation7] ss:$8 sps:$4 sm:$0xff]   ;;  %v823_v27 = vmov 0  }
  0x4c   :  { %616 = vmatpush3.bf16.msra.mxu0 %v647_v1  ;;  %v650_v6 = vld [vmem:[#allocation5 + $0x18] sm:$0xff]   ;;  %304 = vmatprep.subr.bf16.mxu1 %v655_v4  ;;  %v661_v9 = vld [vmem:[#allocation7 + $0x24] ss:$8 sps:$4 sm:$0xff]   ;;  %v663_v11 = vld [vmem:[#allocation7 + $0x20] ss:$8 sps:$4 sm:$0xff]   ;;  %v215_v53 = vshrl.u32 %v214_v52, 7 }
  0x4d   :  { %617 = vmatprep.subr.bf16.mxu0 %v821_v0  ;;  %v658_v7 = vld [vmem:[#allocation7 + $0x14] ss:$8 sps:$4 sm:$0xff]   ;;  %305 = vmatpush1.bf16.msra.mxu1 %v657_v5  ;;  %v660_v8 = vld [vmem:[#allocation7 + $0x10] ss:$8 sps:$4 sm:$0xff]   ;;  %v651_v10 = vld [vmem:[#allocation5 + $0x20] sm:$0xff]  }
  0x4e   :  { %306 = vmatprep.subr.bf16.mxu1 %v658_v7  ;;  %v652_v12 = vld [vmem:[#allocation5 + $0x28] sm:$0xff]   ;;  %v664_v13 = vld [vmem:[#allocation7 + $0x34] ss:$8 sps:$4 sm:$0xff]   ;;  %v666_v14 = vld [vmem:[#allocation7 + $0x30] ss:$8 sps:$4 sm:$0xff]   ;;  %336 = vmatprep.mubr.bf16.mxu1 %v823_v27  ;;  %v216_v54 = vsub.s32 0, %v215_v53 }
  0x4f   :  { %v667_v15 = vld [vmem:[#allocation7 + $0x44] ss:$8 sps:$4 sm:$0xff]   ;;  %v653_v16 = vld [vmem:[#allocation5 + $0x30] sm:$0xff]   ;;  %v669_v17 = vld [vmem:[#allocation7 + $0x40] ss:$8 sps:$4 sm:$0xff]   ;;  %v220_v56 = vsub.s32 1, %v215_v53 }
  0x50   :  { %618 = vmatpush3.bf16.msra.mxu0 %v648_v2  ;;  %v670_v18 = vld [vmem:[#allocation7 + $0x54] ss:$8 sps:$4 sm:$0xff]   ;;  %v672_v21 = vld [vmem:[#allocation7 + $0x50] ss:$8 sps:$4 sm:$0xff]   ;;  %v673_v23 = vld [vmem:[#allocation7 + $0x64] ss:$8 sps:$4 sm:$0xff]  }
  0x51   :  { %619 = vmatprep.subr.bf16.mxu0 %v821_v0  ;;  %307 = vmatpush1.bf16.msra.mxu1 %v660_v8  ;;  %v654_v19 = vld [vmem:[#allocation5 + $0x38] sm:$0xff]   ;;  %v675_v24 = vld [vmem:[#allocation7 + $0x60] ss:$8 sps:$4 sm:$0xff]   ;;  %v683_v32 = vld [vmem:[#allocation8 + $0x50] sm:$0xff]  }
  0x52   :  { %308 = vmatprep.subr.bf16.mxu1 %v661_v9  ;;  %v81_v20 = vld [vmem:[#allocation2] sm:$0xff]  ;;  %v679_v28 = vld [vmem:[#allocation8 + $0x40] sm:$0xff]   ;;  %v681_v30 = vld [vmem:[#allocation8 + $0x48] sm:$0xff]  }
  0x53   :  { %v82_v22 = vpack.c.bf16 %v81_v20, %v81_v20  ;;  %v676_v25 = vld [vmem:[#allocation7 + $0x74] ss:$8 sps:$4 sm:$0xff]   ;;  %v678_v26 = vld [vmem:[#allocation7 + $0x70] ss:$8 sps:$4 sm:$0xff]   ;;  %v680_v29 = vld [vmem:[#allocation8] sm:$0xff]  }
  0x54   :  { %620 = vmatpush3.bf16.msra.mxu0 %v649_v3  ;;  %v682_v31 = vld [vmem:[#allocation8 + $0x8] sm:$0xff]   ;;  %v684_v33 = vld [vmem:[#allocation8 + $0x10] sm:$0xff]   ;;  %v685_v34 = vld [vmem:[#allocation8 + $0x58] sm:$0xff]  }
  0x55   :  { %621 = vmatprep.subr.bf16.mxu0 %v821_v0  ;;  %309 = vmatpush1.bf16.msra.mxu1 %v663_v11  ;;  %v686_v35 = vld [vmem:[#allocation8 + $0x18] sm:$0xff]   ;;  %v687_v36 = vld [vmem:[#allocation8 + $0x60] sm:$0xff]   ;;  %v689_v38 = vld [vmem:[#allocation8 + $0x68] sm:$0xff]  }
  0x56   :  { %310 = vmatprep.subr.bf16.mxu1 %v664_v13  ;;  %v688_v37 = vld [vmem:[#allocation8 + $0x20] sm:$0xff]   ;;  %v690_v39 = vld [vmem:[#allocation8 + $0x28] sm:$0xff]   ;;  %v542_v40 = vld [vmem:[%s942_s2] ss:$0 sm:$0xff] }
  0x57   :  { %v691_v48 = vld [vmem:[#allocation8 + $0x70] sm:$0xff]   ;;  %v693_v50 = vld [vmem:[#allocation8 + $0x78] sm:$0xff]  }
  0x58   :  { %622 = vmatpush3.bf16.msra.mxu0 %v650_v6  ;;  %v692_v49 = vld [vmem:[#allocation8 + $0x30] sm:$0xff]   ;;  %v694_v51 = vld [vmem:[#allocation8 + $0x38] sm:$0xff]  }
  0x59   :  { %623 = vmatprep.subr.bf16.mxu0 %v821_v0  ;;  %311 = vmatpush1.bf16.msra.mxu1 %v666_v14  ;;  %v212_v55 = vld [vmem:[%s944_s4] sm:$0x3]  ;;  %s824_s4 = smov [#allocation10]  }
  0x5a   :  { %312 = vmatprep.subr.bf16.mxu1 %v667_v15  ;;  %v217_v57 = vrot.slane %v212_v55, %v216_v54  ;;  %v221_v58 = vrot.slane %v212_v55, %v220_v56  ;;  %v567_v6 = vld [vmem:[%s946_s6] ss:$0 sm:$0xff]  ;;  %s531_s30 = sshll.u32 %s824_s4, 4  ;;  %s532_s30 = int_to_ptr.vmem [resolvable:$true] %s531_s30 }
  0x5b   :  { %s783_s8 = scalar_lea.vmem %s532_s30, 128  ;;  %p788_p5 = scmp.lt.s32.totalorder %s532_s30, %s532_s30 }
  0x5c   :  { %624 = vmatpush3.bf16.msra.mxu0 %v651_v10  ;;  %p784_p4 = scmp.ne.s32.totalorder %s532_s30, %s783_s8  ;;  %p789_p6 = scmp.lt.s32.totalorder %s783_s8, %s783_s8 }
  0x5d   :  { %625 = vmatprep.subr.bf16.mxu0 %v821_v0  ;;  %313 = vmatpush1.bf16.msra.mxu1 %v669_v17 }
  0x5e   :  { %314 = vmatprep.subr.bf16.mxu1 %v670_v18  ;;  %p790_p7 = por %p789_p6, %p788_p5 }
  0x60   :  { %626 = vmatpush3.bf16.msra.mxu0 %v652_v12  ;;  %p791_p8 = pnand %p790_p7, %p784_p4 }
  0x61   :  { %627 = vmatprep.subr.bf16.mxu0 %v821_v0  ;;  %315 = vmatpush1.bf16.msra.mxu1 %v672_v21 }
  0x62   :  { %316 = vmatprep.subr.bf16.mxu1 %v673_v23 }
  0x64   :  { %628 = vmatpush3.bf16.msra.mxu0 %v653_v16 }
  0x65   :  { %629 = vmatprep.subr.bf16.mxu0 %v821_v0  ;;  %317 = vmatpush1.bf16.msra.mxu1 %v675_v24 }
  0x66   :  { %318 = vmatprep.subr.bf16.mxu1 %v676_v25 }
  0x68   :  { %630 = vmatpush3.bf16.msra.mxu0 %v654_v19 }
  0x69   :  { %319 = vmatpush1.bf16.msra.mxu1 %v678_v26  ;;  %593 = vmatprep.subr.bf16.mxu0 %v679_v28 }
  0x6b   :  { %632 = vmatmul.mubr.bf16.vlgmr.msra.gmra.mrb[0].mxu0 %v82_v22 }
  0x6c   :  { %594 = vmatpush3.bf16.msra.mxu0 %v680_v29 }
  0x6d   :  { %595 = vmatprep.subr.bf16.mxu0 %v681_v30 }
  0x70   :  { %596 = vmatpush3.bf16.msra.mxu0 %v682_v31 }
  0x71   :  { %597 = vmatprep.subr.bf16.mxu0 %v683_v32 }
  0x74   :  { %598 = vmatpush3.bf16.msra.mxu0 %v684_v33 }
  0x75   :  { %599 = vmatprep.subr.bf16.mxu0 %v685_v34 }
  0x78   :  { %600 = vmatpush3.bf16.msra.mxu0 %v686_v35 }
  0x79   :  { %601 = vmatprep.subr.bf16.mxu0 %v687_v36 }
  0x7c   :  { %602 = vmatpush3.bf16.msra.mxu0 %v688_v37 }
  0x7d   :  { %603 = vmatprep.subr.bf16.mxu0 %v689_v38 }
  0x80   :  { %604 = vmatpush3.bf16.msra.mxu0 %v690_v39 }
  0x81   :  { %605 = vmatprep.subr.bf16.mxu0 %v691_v48 }
  0x84   :  { %606 = vmatpush3.bf16.msra.mxu0 %v692_v49 }
  0x85   :  { %607 = vmatprep.subr.bf16.mxu0 %v693_v50 }
  0x88   :  { %608 = vmatpush3.bf16.msra.mxu0 %v694_v51 }
 0x13e   :  { %v188_v41 = vpop.f32.mrb[0].mxu0 }
 0x13f   :  { %v189_v42 = vadd.f32 %v542_v40, %v188_v41  ;;  %v633_v43 = vpop.f32.mrb[1].mxu0 }
 0x140   :  { %v191_v44 = vpop.f32.mrb[2].mxu0 }
 0x141   :  { %v194_v45 = vmax.f32 %v189_v42, 0.0  ;;  %v634_v46 = vpop.f32.mrb[3].mxu0 }
 0x143   :  { %v195_v47 = vpack.c.bf16 %v194_v45, %v194_v45 }
 0x145   :  { %337 = vmatmul.mubr.bf16.vlgmr.msra.gmra.mrb[0].mxu1 %v195_v47 }
 0x218   :  { %v338_v59 = vpop.f32.mrb[0].mxu1 }
 0x219   :  { %v339_v60 = vadd.f32 %v338_v59, %v217_v57  ;;  %v340_v61 = vpop.f32.mrb[1].mxu1 }
 0x21a   :  { %v341_v62 = vadd.f32 %v340_v61, %v221_v58  ;;  %v342_v63 = vpop.f32.mrb[2].mxu1 }
 0x21b   :  { %v345_v0 = vmax.f32 %v339_v60, 0.0  ;;  %v343_v1 = vpop.f32.mrb[3].mxu1 }
 0x21c   :  { %v346_v2 = vmax.f32 %v341_v62, 0.0 }
 0x21d   :  { %v347_v4 = vpack.c.bf16 %v345_v0, %v345_v0 }
 0x21e   :  { %v348_v3 = vpack.c.bf16 %v346_v2, %v346_v2 }
 0x220   :  { %516 = vmatprep.mubr.bf16.mxu0 %v348_v3 }
 0x221   :  { %517 = vmatmul.mubr.bf16.vlgmr.msra.gmra.mrb[4].mxu0 %v347_v4 }
 0x2f4   :  { %v609_v5 = vpop.f32.mrb[4].mxu0 }
 0x2f5   :  { %v610_v7 = vpop.f32.mrb[5].mxu0 }
 0x2f6   :  { %v611_v8 = vadd.f32 %v610_v7, %v609_v5  ;;  %v612_v9 = vpop.f32.mrb[6].mxu0 }
 0x2f7   :  { %v613_v10 = vpop.f32.mrb[7].mxu0 }
 0x2f8   :  { %v519_v11 = vadd.f32 %v611_v8, %v567_v6 }
 0x2fa   :  { %524 = vst [vmem:[#allocation10] sm:$0xff] %v519_v11 }
 0x2fb   :  { %794 = shalt.err (!%p791_p8)
}
 0x2fc   :  { %s795_s6 = scalar_lea.hbm %s947_s7, 128 }
 0x2fd   :  { %p796_p9 = scmp.ne.s32.totalorder %s947_s7, %s795_s6  ;;  %p799_p10 = scmp.lt.u32.totalorder %s795_s6, %s947_s7 }
 0x2ff   :  { %p801_p11 = pnand %p799_p10, %p796_p9 }
 0x301   :  { %804 = shalt.err (!%p801_p11)
}
 0x302   :  { %534 = dma.vmem_to_hbm [thread:$0]  %s532_s30, 128, %s947_s7, [#allocation4]  }
 0x303   :  { %811 = dma.done.wait [#allocation4], 128  }
 0x304   :  { %812 = vsyncadd [#allocation4], 4294967168 }
 0x305   :  { %538 = vsyncpa [#allocation3], 1 }
 0x306   :  { %539 = vsyncpa [#allocation6], 1 }
 0x307   :  { %540 = vsyncpa [#allocation9], 1 }
 0x308   :  { %541 = vsyncpa [#allocation4], 1 }

</bundles_post_ra>
